<compile_context>
chip_gen: v7x
topology: tpu7x:2x2x1
jax: 0.10.0
libtpu: 0.0.40
codegen_flags: <defaults>
</compile_context>

<pallas_src>
import jax
import jax.numpy as jnp
from jax.experimental import pallas as pl
from jax.experimental.pallas import tpu as pltpu

_LANES = 128      # lane width: padding target for hidden + output slabs
_SUBLANES = 8


def _round_up(n, m):
    return (n + m - 1) // m * m


def _mlp_kernel(x_ref, w1_ref, b1_ref, w2_ref, b2_ref, out_ref):
    """One batch tile of the fused 2-layer MLP (n_output == 1 fast path).

    x_ref  : (TB, F)    VMEM  input rows
    w1_ref : (F, HP)    VMEM  hidden weight (pre-transposed, lane-padded), resident
    b1_ref : (1, HP)    VMEM  hidden bias (lane-padded), resident
    w2_ref : (1, HP)    VMEM  output weight row (predict.weight, lane-padded), resident
    b2_ref : (1, 1)     SMEM  output bias scalar
    out_ref: (TB, 128)  VMEM  y broadcast across all 128 lanes (lane-dense store)
    """
    x = x_ref[...]
    n_feature = x_ref.shape[1]

    # ---- Layer 1: x @ W1 + b1 with tiny K -> unrolled VPU broadcast-FMAs (no MXU). ----
    h = x[:, 0:1] * w1_ref[0:1, :] + b1_ref[...]              # (TB, HP)
    for f in range(1, n_feature):                             # static unroll; F is small
        h = h + x[:, f:f + 1] * w1_ref[f:f + 1, :]
    h = jnp.maximum(h, 0.0)                                   # ReLU on the VPU; padded lanes stay 0

    # ---- Layer 2: single-output head -> VPU multiply + XLU lane reduce (no MXU). ----
    y = jnp.sum(h * w2_ref[...], axis=-1, keepdims=True) + b2_ref[0, 0]   # (TB, 1)

    # Lane-dense store: replicate the output column across all 128 lanes (wrapper slices lane 0).
    out_ref[...] = jnp.broadcast_to(y, out_ref.shape).astype(out_ref.dtype)


def net_forward(x, w1, b1, w2, b2, *, block_batch=512):
    """Fused MLP forward pass.

    x  : (B, F) float32
    w1 : (F, H) float32   (PyTorch hidden.weight.T)
    b1 : (1, H) float32
    w2 : (H, O) float32   (PyTorch predict.weight.T)
    b2 : (1, O) float32
    returns (B, O) float32
    """
    batch, n_feature = x.shape
    n_hidden = w1.shape[1]
    n_output = w2.shape[1]
    if n_output != 1:
        # TODO(synk): for n_output > 1, pad O to a multiple of 128 and compute the head as
        # an MXU matmul (h @ w2_pad) instead of the lane-reduce fast path.
        raise NotImplementedError("kernel specialized to n_output == 1 (the module's usage)")

    hp = _round_up(n_hidden, _LANES)

    # Zero-pad params to lane-dense layouts (zeros keep the math exact: relu(0)=0, 0*w=0).
    w1p = jnp.zeros((n_feature, hp), jnp.float32).at[:, :n_hidden].set(w1)
    b1p = jnp.zeros((1, hp), jnp.float32).at[:, :n_hidden].set(jnp.reshape(b1, (1, n_hidden)))
    w2p = jnp.zeros((1, hp), jnp.float32).at[:, :n_hidden].set(jnp.reshape(w2, (n_hidden, 1)).T)
    b2s = jnp.reshape(b2, (1, 1)).astype(jnp.float32)

    # Batch tiling: big tiles amortize per-step overhead; weights stay VMEM-resident
    # across grid steps (constant index maps).  Footprint is tiny vs 64 MiB VMEM (v7x).
    tb = min(block_batch, _round_up(batch, _SUBLANES))
    bp = _round_up(batch, tb)
    xp = x if bp == batch else jnp.zeros((bp, n_feature), x.dtype).at[:batch, :].set(x)
    grid = (bp // tb,)

    flops = 2 * bp * hp * (n_feature + 1)
    bytes_accessed = 4 * (bp * n_feature + n_feature * hp + 2 * hp + 1 + bp * _LANES)

    out_padded = pl.pallas_call(
        _mlp_kernel,
        out_shape=jax.ShapeDtypeStruct((bp, _LANES), jnp.float32),
        grid=grid,
        in_specs=[
            pl.BlockSpec((tb, n_feature), lambda i: (i, 0)),         # x batch tile
            pl.BlockSpec((n_feature, hp), lambda i: (0, 0)),         # W1 (resident)
            pl.BlockSpec((1, hp), lambda i: (0, 0)),                 # b1 (resident)
            pl.BlockSpec((1, hp), lambda i: (0, 0)),                 # W2 row (resident)
            pl.BlockSpec(memory_space=pltpu.MemorySpace.SMEM),       # b2 scalar in SMEM
        ],
        out_specs=pl.BlockSpec((tb, _LANES), lambda i: (i, 0)),
        compiler_params=pltpu.CompilerParams(dimension_semantics=("parallel",)),
        cost_estimate=pl.CostEstimate(flops=flops, transcendentals=0,
                                      bytes_accessed=bytes_accessed),
    )(xp, w1p, b1p, w2p, b2s)

    return out_padded[:batch, :n_output]


def init_params(key, n_feature, n_hidden, n_output):
    """Deterministic init mirroring torch.nn.Linear default (U[-1/sqrt(fan_in), 1/sqrt(fan_in)])."""
    k1, k2, k3, k4 = jax.random.split(key, 4)
    lim1 = 1.0 / jnp.sqrt(jnp.float32(n_feature))
    lim2 = 1.0 / jnp.sqrt(jnp.float32(n_hidden))
    w1 = jax.random.uniform(k1, (n_feature, n_hidden), jnp.float32, -lim1, lim1)
    b1 = jax.random.uniform(k2, (1, n_hidden), jnp.float32, -lim1, lim1)
    w2 = jax.random.uniform(k3, (n_hidden, n_output), jnp.float32, -lim2, lim2)
    b2 = jax.random.uniform(k4, (1, n_output), jnp.float32, -lim2, lim2)
    return w1, b1, w2, b2


if __name__ == "__main__":
    # Shapes implied by the module usage: x = train_data[:, :2] -> n_feature = 2.
    batch, n_feature, n_hidden, n_output = 8, 2, 32, 1

    key = jax.random.PRNGKey(0)
    kx, kp = jax.random.split(key)
    x = jax.random.normal(kx, (batch, n_feature), jnp.float32)
    w1, b1, w2, b2 = init_params(kp, n_feature, n_hidden, n_output)

    out = jax.block_until_ready(net_forward(x, w1, b1, w2, b2))

    # Pure-JAX reference of the same math.
    ref = jnp.maximum(x @ w1 + b1, 0.0) @ w2 + b2
    assert out.shape == (batch, n_output)
    assert jnp.allclose(out, ref, atol=1e-5, rtol=1e-5)

    print("KERNEL_OK")
</pallas_src>

<mosaic_0001>
module attributes {stable_mosaic.version = 11 : i64} {
  func.func @_mlp_kernel(%arg0: i32, %arg1: memref<8x2xf32, #tpu.memory_space<vmem>>, %arg2: memref<2x128xf32, #tpu.memory_space<vmem>>, %arg3: memref<1x128xf32, #tpu.memory_space<vmem>>, %arg4: memref<1x128xf32, #tpu.memory_space<vmem>>, %arg5: memref<1x1xf32, #tpu.memory_space<smem>>, %arg6: memref<8x128xf32, #tpu.memory_space<vmem>>) attributes {dimension_semantics = [#tpu.dimension_semantics<parallel>], iteration_bounds = array<i64: 1>, scalar_prefetch = 0 : i64, scratch_operands = 0 : i64, tpu.core_type = #tpu.core_type<tc>, window_params = [{transform_indices = @transform_0, window_bounds = array<i64: 8, 2>}, {pipeline_mode = #tpu.pipeline_mode<synchronous>, transform_indices = @transform_1, window_bounds = array<i64: 2, 128>}, {pipeline_mode = #tpu.pipeline_mode<synchronous>, transform_indices = @transform_2, window_bounds = array<i64: 1, 128>}, {pipeline_mode = #tpu.pipeline_mode<synchronous>, transform_indices = @transform_3, window_bounds = array<i64: 1, 128>}, {transform_indices = @transform_4, window_bounds = array<i64: 1, 1>}, {transform_indices = @transform_5, window_bounds = array<i64: 8, 128>}]} {
    %c0 = arith.constant 0 : index
    %c0_0 = arith.constant 0 : index
    %0 = vector.load %arg1[%c0, %c0_0] : memref<8x2xf32, #tpu.memory_space<vmem>>, vector<8x2xf32>
    %1 = vector.extract_strided_slice %0 {offsets = [0, 0], sizes = [8, 1], strides = [1, 1]} : vector<8x2xf32> to vector<8x1xf32>
    %c0_1 = arith.constant 0 : index
    %c0_2 = arith.constant 0 : index
    %2 = vector.load %arg2[%c0_1, %c0_2] : memref<2x128xf32, #tpu.memory_space<vmem>>, vector<1x128xf32>
    %3 = vector.broadcast %1 : vector<8x1xf32> to vector<8x128xf32>
    %4 = vector.broadcast %2 : vector<1x128xf32> to vector<8x128xf32>
    %5 = arith.mulf %3, %4 : vector<8x128xf32>
    %c0_3 = arith.constant 0 : index
    %c0_4 = arith.constant 0 : index
    %6 = vector.load %arg3[%c0_3, %c0_4] : memref<1x128xf32, #tpu.memory_space<vmem>>, vector<1x128xf32>
    %7 = vector.broadcast %6 : vector<1x128xf32> to vector<8x128xf32>
    %8 = arith.addf %5, %7 : vector<8x128xf32>
    %9 = vector.extract_strided_slice %0 {offsets = [0, 1], sizes = [8, 1], strides = [1, 1]} : vector<8x2xf32> to vector<8x1xf32>
    %c1 = arith.constant 1 : index
    %c0_5 = arith.constant 0 : index
    %10 = vector.load %arg2[%c1, %c0_5] : memref<2x128xf32, #tpu.memory_space<vmem>>, vector<1x128xf32>
    %11 = vector.broadcast %9 : vector<8x1xf32> to vector<8x128xf32>
    %12 = vector.broadcast %10 : vector<1x128xf32> to vector<8x128xf32>
    %13 = arith.mulf %11, %12 : vector<8x128xf32>
    %14 = arith.addf %8, %13 : vector<8x128xf32>
    %cst = arith.constant 0.000000e+00 : f32
    %15 = vector.broadcast %cst : f32 to vector<8x128xf32>
    %16 = arith.maximumf %14, %15 : vector<8x128xf32>
    %c0_6 = arith.constant 0 : index
    %c0_7 = arith.constant 0 : index
    %17 = vector.load %arg4[%c0_6, %c0_7] : memref<1x128xf32, #tpu.memory_space<vmem>>, vector<1x128xf32>
    %18 = vector.broadcast %17 : vector<1x128xf32> to vector<8x128xf32>
    %19 = arith.mulf %16, %18 : vector<8x128xf32>
    %cst_8 = arith.constant dense<0.000000e+00> : vector<8xf32>
    %20 = vector.multi_reduction <add>, %19, %cst_8 [1] : vector<8x128xf32> to vector<8xf32>
    %21 = vector.shape_cast %20 : vector<8xf32> to vector<8x1xf32>
    %c0_9 = arith.constant 0 : index
    %c0_10 = arith.constant 0 : index
    %22 = memref.load %arg5[%c0_9, %c0_10] : memref<1x1xf32, #tpu.memory_space<smem>>
    %23 = vector.broadcast %22 : f32 to vector<8x1xf32>
    %24 = arith.addf %21, %23 : vector<8x1xf32>
    %25 = vector.shape_cast %24 : vector<8x1xf32> to vector<8x1xf32>
    %26 = vector.broadcast %25 : vector<8x1xf32> to vector<8x128xf32>
    %c0_11 = arith.constant 0 : index
    %c0_12 = arith.constant 0 : index
    %27 = vector.load %arg6[%c0_11, %c0_12] : memref<8x128xf32, #tpu.memory_space<vmem>>, vector<8x128xf32>
    tpu.vector_store %arg6[%c0_11, %c0_12], %26 {strides = array<i32>} : memref<8x128xf32, #tpu.memory_space<vmem>>, vector<8x128xf32>,
    return
  }
  func.func @transform_0(%arg0: i32) -> (i32, i32) {
    %c0_i32 = arith.constant 0 : i32
    %c0_i32_0 = arith.constant 0 : i32
    return %arg0, %c0_i32 : i32, i32
  }
  func.func @transform_1(%arg0: i32) -> (i32, i32) {
    %c0_i32 = arith.constant 0 : i32
    %c0_i32_0 = arith.constant 0 : i32
    %c0_i32_1 = arith.constant 0 : i32
    return %c0_i32, %c0_i32_0 : i32, i32
  }
  func.func @transform_2(%arg0: i32) -> (i32, i32) {
    %c0_i32 = arith.constant 0 : i32
    %c0_i32_0 = arith.constant 0 : i32
    %c0_i32_1 = arith.constant 0 : i32
    return %c0_i32, %c0_i32_0 : i32, i32
  }
  func.func @transform_3(%arg0: i32) -> (i32, i32) {
    %c0_i32 = arith.constant 0 : i32
    %c0_i32_0 = arith.constant 0 : i32
    %c0_i32_1 = arith.constant 0 : i32
    return %c0_i32, %c0_i32_0 : i32, i32
  }
  func.func @transform_4(%arg0: i32) -> (i32, i32) {
    %c0_i32 = arith.constant 0 : i32
    %c0_i32_0 = arith.constant 0 : i32
    %c0_i32_1 = arith.constant 0 : i32
    return %c0_i32, %c0_i32_0 : i32, i32
  }
  func.func @transform_5(%arg0: i32) -> (i32, i32) {
    %c0_i32 = arith.constant 0 : i32
    %c0_i32_0 = arith.constant 0 : i32
    return %arg0, %c0_i32 : i32, i32
  }
}

</mosaic_0001>

<bundles_post_ra>
// kernel: tpu_custom_call.1
= control target key start
LH: loop header
LB: loop body
LE: loop exit
PB: predicated region body
PF: predicated region fallthrough
CT: control target
= control target key end

     0   :  { %v115_v1 = vmov 0   ;;  %s178_s0 = inlined_call_operand.vmem [shape: f32[8,2], index: 0, kind: input, shape index: {}]   ;;  %s179_s1 = inlined_call_operand.vmem [shape: f32[2,128], index: 1, kind: input, shape index: {}]   ;;  %s180_s2 = inlined_call_operand.vmem [shape: f32[1,128], index: 2, kind: input, shape index: {}]   ;;  %s181_s3 = inlined_call_operand.vmem [shape: f32[1,128], index: 3, kind: input, shape index: {}]   ;;  %s182_s4 = inlined_call_operand.<no memory space> [shape: f32[1,1], index: 4, kind: input, shape index: {}]   ;;  %s183_s5 = inlined_call_operand.hbm [shape: f32[8,128], index: 5, kind: output, shape index: {}]  }
   0x1   :  { %v22_v0 = vld [vmem:[%s178_s0] sm:$0xff]  ;;  %89 = vset.pattern.permute.xlu0 %v115_v1 }
   0x2   :  { %11 = vsyncpa [#allocation4], 0  ;;  %26 = vperm.xlu0 %89, %v22_v0   ;;  %v116_v2 = vmov 1   ;;  %v82_v3 = vld [vmem:[%s179_s1] ss:$0 sm:$0xff]  ;;  %v65_v15 = vstv %s182_s4 }
   0x3   :  { %v83_v6 = vld [vmem:[%s180_s2] ss:$0 sm:$0xff]  ;;  %v84_v7 = vld [vmem:[%s179_s1 + $0x1] ss:$0 sm:$0xff]  ;;  %s117_s2 = smov [#allocation3]  }
   0x4   :  { %v85_v12 = vld [vmem:[%s181_s3] ss:$0 sm:$0xff]  ;;  %s74_s29 = sshll.u32 %s117_s2, 4  ;;  %s75_s29 = int_to_ptr.vmem [resolvable:$true] %s74_s29 }
   0x5   :  { %s91_s1 = scalar_lea.vmem %s75_s29, 128  ;;  %p96_p1 = scmp.lt.s32.totalorder %s75_s29, %s75_s29 }
   0x6   :  { %90 = vset.pattern.permute.xlu0 %v116_v2  ;;  %p92_p0 = scmp.ne.s32.totalorder %s75_s29, %s91_s1  ;;  %p97_p2 = scmp.lt.s32.totalorder %s91_s1, %s91_s1 }
   0x7   :  { %44 = vperm.xlu0 %90, %v22_v0  }
   0x8   :  { %p98_p3 = por %p97_p2, %p96_p1 }
   0xa   :  { %p99_p4 = pnand %p98_p3, %p92_p0 }
  0x81   :  { %v27_v4 = vpop.permute.xlu0 %26 }
  0x82   :  { %v33_v5 = vmul.f32 %v82_v3, %v27_v4 }
  0x84   :  { %v41_v9 = vadd.f32 %v83_v6, %v33_v5 }
  0x86   :  { %v45_v8 = vpop.permute.xlu0 %44 }
  0x87   :  { %v51_v10 = vmul.f32 %v84_v7, %v45_v8 }
  0x89   :  { %v52_v11 = vadd.f32 %v51_v10, %v41_v9 }
  0x8b   :  { %v53_v13 = vmax.f32 %v52_v11, 0.0 }
  0x8d   :  { %v61_v14 = vmul.f32 %v85_v12, %v53_v13 }
  0x8f   :  { %62 = vadd.xlane.f32.xlu1 %v61_v14 }
 0x11c   :  { %v63_v16 = vpop.xlane.xlu1 %62 }
 0x11d   :  { %v66_v17 = vadd.f32 %v65_v15, %v63_v16 }
 0x11f   :  { %67 = vst [vmem:[#allocation3] sm:$0xff] %v66_v17 }
 0x120   :  { %102 = shalt.err (!%p99_p4)
}
 0x121   :  { %s103_s6 = scalar_lea.hbm %s183_s5, 128 }
 0x122   :  { %p104_p5 = scmp.ne.s32.totalorder %s183_s5, %s103_s6  ;;  %p107_p6 = scmp.lt.u32.totalorder %s103_s6, %s183_s5 }
 0x124   :  { %p109_p7 = pnand %p107_p6, %p104_p5 }
 0x126   :  { %112 = shalt.err (!%p109_p7)
}
 0x127   :  { %77 = dma.vmem_to_hbm [thread:$0]  %s75_s29, 128, %s183_s5, [#allocation4]  }
 0x128   :  { %113 = dma.done.wait [#allocation4], 128  }
 0x129   :  { %114 = vsyncadd [#allocation4], 4294967168 }
 0x12a   :  { %81 = vsyncpa [#allocation4], 1 }

</bundles_post_ra>
